<compile_context>
chip_gen: v5e
topology: v5e:2x2
jax: 0.10.0
libtpu: 0.0.40
codegen_flags: <defaults>
</compile_context>

<pallas_src>
import math

import jax
import jax.numpy as jnp
from jax.experimental import pallas as pl
from jax.experimental.pallas import tpu as pltpu


# ---------------------------------------------------------------------------
# In-kernel loss helpers (max-shifted, numerically stable, raw-dtype reduces)
# ---------------------------------------------------------------------------
def _ce_loss_mean(s_raw, inv_t):
    """Mean InfoNCE (CE vs diagonal target) over all rows of s_raw (..., b, b)."""
    b = s_raw.shape[-1]
    row = jax.lax.broadcasted_iota(jnp.int32, (b, b), 0)
    col = jax.lax.broadcasted_iota(jnp.int32, (b, b), 1)
    eye = row == col
    zero = jnp.array(0.0, dtype=s_raw.dtype)
    # Max / diagonal reduced on the raw dtype (packed bf16 vregs when bf16 in).
    m_raw = jnp.max(s_raw, axis=-1, keepdims=True)                        # (..., b, 1)
    d_raw = jnp.sum(jnp.where(eye, s_raw, zero), axis=-1, keepdims=True)  # (..., b, 1)
    m2 = m_raw.astype(jnp.float32) * inv_t                                # max(s)/T
    ds = d_raw.astype(jnp.float32) * inv_t                                # s_ii / T
    e = jnp.exp((s_raw.astype(jnp.float32) - m_raw.astype(jnp.float32)) * inv_t)
    sum_e = jnp.sum(e, axis=-1, keepdims=True)                            # (..., b, 1)
    loss_row = jnp.log(sum_e) + m2 - ds
    return jnp.mean(loss_row)                                             # scalar


def _debiased_loss_mean(s_raw, inv_t, prior_n, inv_1mp, log_floor):
    """Mean debiased-SimCLR loss over all rows/slices of s_raw (..., b, b)."""
    b = s_raw.shape[-1]
    row = jax.lax.broadcasted_iota(jnp.int32, (b, b), 0)
    col = jax.lax.broadcasted_iota(jnp.int32, (b, b), 1)
    eye = row == col
    zero = jnp.array(0.0, dtype=s_raw.dtype)
    m_raw = jnp.max(s_raw, axis=-1, keepdims=True)                        # (..., b, 1)
    d_raw = jnp.sum(jnp.where(eye, s_raw, zero), axis=-1, keepdims=True)  # (..., b, 1)
    m2 = m_raw.astype(jnp.float32) * inv_t
    ds = d_raw.astype(jnp.float32) * inv_t
    e = jnp.exp((s_raw.astype(jnp.float32) - m_raw.astype(jnp.float32)) * inv_t)
    sum_e = jnp.sum(e, axis=-1, keepdims=True)                            # (..., b, 1)
    diag_e = jnp.exp(ds - m2)               # exp(s_ii/T - m) from the row scalar (EUP)
    neg_e = sum_e - diag_e
    flr = jnp.exp(log_floor - m2)           # exp(-N/T) shifted into the same domain
    ng = jnp.maximum((neg_e - prior_n * diag_e) * inv_1mp, flr)
    denom = jnp.maximum(diag_e + ng, 1e-37)  # robustness clamp against log(0)
    loss_row = jnp.log(denom) + m2 - ds
    return jnp.mean(loss_row)                                             # scalar


def _scatter_rows(out_shape, vals, row_axis):
    """Build a lane-dense f32 tile with vals[k] broadcast along row k."""
    rows = jax.lax.broadcasted_iota(jnp.int32, out_shape, row_axis)
    tile = jnp.zeros(out_shape, jnp.float32)
    for k, v in enumerate(vals):
        tile = tile + jnp.where(rows == k, v, 0.0)
    return tile


# ---------------------------------------------------------------------------
# Kernel factories (hparams baked as closure constants; epoch never appears)
# ---------------------------------------------------------------------------
def _make_vlad_kernel(t2v, v2t):
    def kernel(qvt_ref, qvv_ref, fvt_ref, fvv_ref, cvt_ref, cvv_ref, out_ref):
        vals = (
            _debiased_loss_mean(qvt_ref[0], **t2v),   # quant t2v   (b, b)
            _debiased_loss_mean(qvv_ref[0], **v2t),   # quant v2t
            _debiased_loss_mean(fvt_ref[0], **t2v),   # feat  t2v
            _debiased_loss_mean(fvv_ref[0], **v2t),   # feat  v2t
            _debiased_loss_mean(cvt_ref[0], **t2v),   # code  t2v   (S, b, b) -> mean over S
            _debiased_loss_mean(cvv_ref[0], **v2t),   # code  v2t
        )
        out_ref[...] = _scatter_rows(out_ref.shape, vals, row_axis=1)
    return kernel


def _make_cls_kernel(inv_t_t2v, inv_t_v2t):
    def kernel(qct_ref, qcv_ref, cct_ref, ccv_ref, fct_ref, fcv_ref, out_ref):
        vals = (
            _ce_loss_mean(qct_ref[...], inv_t_t2v),   # quant t2v
            _ce_loss_mean(qcv_ref[...], inv_t_v2t),   # quant v2t
            _ce_loss_mean(cct_ref[...], inv_t_t2v),   # code  t2v
            _ce_loss_mean(ccv_ref[...], inv_t_v2t),   # code  v2t
            _ce_loss_mean(fct_ref[...], inv_t_t2v),   # feat  t2v
            _ce_loss_mean(fcv_ref[...], inv_t_v2t),   # feat  v2t
        )
        out_ref[...] = _scatter_rows(out_ref.shape, vals, row_axis=0)
    return kernel


# ---------------------------------------------------------------------------
# pallas_call wrappers
# ---------------------------------------------------------------------------
def _vmem_limit_bytes(working_set_bytes):
    try:
        cap = int(pltpu.get_tpu_info().vmem_capacity_bytes)
    except Exception:  # conservative fallback (v7x per-TC VMEM)
        cap = 64 * 1024 * 1024
    need = int(working_set_bytes * 1.25) + (1 << 20)      # ~25% headroom + 1 MiB
    return int(min(max(need, 16 * 1024 * 1024), int(cap * 0.9)))


def _vlad_losses(qvt, qvv, fvt, fvv, cvt, cvv, t2v_params, v2t_params):
    """Per-cluster debiased losses.  Returns (C, 6) f32:
       [quant_t2v, quant_v2t, feat_t2v, feat_v2t, code_t2v(mean S), code_v2t(mean S)]."""
    C, b, _ = qvt.shape
    S = cvt.shape[1]
    assert qvv.shape == (C, b, b) and fvt.shape == (C, b, b) and fvv.shape == (C, b, b)
    assert cvt.shape == (C, S, b, b) and cvv.shape == (C, S, b, b)

    in_bytes = max(jnp.dtype(x.dtype).itemsize for x in (qvt, qvv, fvt, fvv, cvt, cvv))
    step_in = (4 * b * b + 2 * S * b * b) * in_bytes       # one grid step's input block
    f32_tmp = 4 * S * b * b * 4                            # cast / exp temporaries headroom
    vmem = _vmem_limit_bytes(2 * step_in + f32_tmp)        # x2: double-buffered inputs

    out = pl.pallas_call(
        _make_vlad_kernel(t2v_params, v2t_params),
        out_shape=jax.ShapeDtypeStruct((C, 8, 128), jnp.float32),
        grid=(C,),
        in_specs=[
            pl.BlockSpec((1, b, b), lambda c: (c, 0, 0)),          # quant t2v
            pl.BlockSpec((1, b, b), lambda c: (c, 0, 0)),          # quant v2t
            pl.BlockSpec((1, b, b), lambda c: (c, 0, 0)),          # feat  t2v
            pl.BlockSpec((1, b, b), lambda c: (c, 0, 0)),          # feat  v2t
            pl.BlockSpec((1, S, b, b), lambda c: (c, 0, 0, 0)),    # code  t2v
            pl.BlockSpec((1, S, b, b), lambda c: (c, 0, 0, 0)),    # code  v2t
        ],
        out_specs=pl.BlockSpec((1, 8, 128), lambda c: (c, 0, 0)),  # disjoint per step
        compiler_params=pltpu.CompilerParams(
            dimension_semantics=("parallel",),
            vmem_limit_bytes=vmem,
        ),
    )(qvt, qvv, fvt, fvv, cvt, cvv)
    return out[:, :6, 0]


def _cls_losses(qct, qcv, cct, ccv, fct, fcv, inv_t_t2v, inv_t_v2t):
    """Per-group CE losses.  Returns (6,) f32 in the same ordering as inputs."""
    b = qct.shape[-1]
    # Leading-dim reshapes are metadata-only (supports 2-D and 3-D cls sims).
    arrs = [x.reshape(-1, b, b) for x in (qct, qcv, cct, ccv, fct, fcv)]

    in_bytes = max(jnp.dtype(x.dtype).itemsize for x in arrs)
    total_in = sum(x.size for x in arrs) * in_bytes
    f32_tmp = max(x.size for x in arrs) * 4 * 3
    vmem = _vmem_limit_bytes(2 * total_in + f32_tmp)

    out = pl.pallas_call(
        _make_cls_kernel(inv_t_t2v, inv_t_v2t),
        out_shape=jax.ShapeDtypeStruct((8, 128), jnp.float32),
        grid=(1,),
        in_specs=[pl.BlockSpec(x.shape, lambda i, nd=x.ndim: (0,) * nd) for x in arrs],
        out_specs=pl.BlockSpec((8, 128), lambda i: (0, 0)),
        compiler_params=pltpu.CompilerParams(
            dimension_semantics=("arbitrary",),
            vmem_limit_bytes=vmem,
        ),
    )(*arrs)
    return out[:6, 0]


# ---------------------------------------------------------------------------
# HybridContrastiveLoss (forward pass) built on the fused kernels
# ---------------------------------------------------------------------------
class HybridContrastiveLossPallas:
    def __init__(self, cls_loss_hparams, vlad_loss_hparams, cls_loss_weight,
                 vlad_loss_weight, code_loss_weight, total_epochs,
                 pq_reg_loss_weight):
        self.cls_t2v_T = float(cls_loss_hparams["t2v_temperature"])
        self.cls_v2t_T = float(cls_loss_hparams["v2t_temperature"])
        self.vlad_t2v_T = float(vlad_loss_hparams["t2v_temperature"])
        self.vlad_v2t_T = float(vlad_loss_hparams["v2t_temperature"])
        self.vlad_t2v_p = float(vlad_loss_hparams["t2v_debias_prior"])
        self.vlad_v2t_p = float(vlad_loss_hparams["v2t_debias_prior"])
        self.cls_loss_weight = float(cls_loss_weight)
        self.vlad_loss_weight = float(vlad_loss_weight)
        self.code_loss_weight = float(code_loss_weight)
        self.total_epochs = total_epochs
        self._smoothing_weight_list = [
            math.cos(e * math.pi / 2 / total_epochs) for e in range(total_epochs + 1)
        ]
        self._pq_reg_loss_weight = pq_reg_loss_weight

    @property
    def pq_reg_loss_weight(self):
        return self._pq_reg_loss_weight

    def smoothing_schedule(self, epoch):
        if isinstance(epoch, int):
            return self._smoothing_weight_list[epoch]
        # Traced epoch: table lookup as data -> no retrace / recompile per epoch.
        table = jnp.asarray(self._smoothing_weight_list, jnp.float32)
        return jnp.take(table, jnp.asarray(epoch, jnp.int32))

    def __call__(self,
                 quant_cls_t2v_sims, quant_cls_v2t_sims,
                 quant_vlad_t2v_sims, quant_vlad_v2t_sims,
                 feat_cls_t2v_sims, feat_cls_v2t_sims,
                 feat_vlad_t2v_sims, feat_vlad_v2t_sims,
                 code_cls_t2v_sims, code_cls_v2t_sims,
                 code_vlad_t2v_sims, code_vlad_v2t_sims,
                 epoch):
        b = quant_cls_t2v_sims.shape[-1]
        n = b - 1

        # --- cls (InfoNCE) group: one tiny single-step kernel launch --------
        cls = _cls_losses(quant_cls_t2v_sims, quant_cls_v2t_sims,
                          code_cls_t2v_sims, code_cls_v2t_sims,
                          feat_cls_t2v_sims, feat_cls_v2t_sims,
                          1.0 / self.cls_t2v_T, 1.0 / self.cls_v2t_T)
        quant_cls_term = cls[0] + cls[1]
        code_cls_term = cls[2] + cls[3]
        feat_cls_term = cls[4] + cls[5]

        # --- vlad (debiased) group: one launch, grid over the cluster axis --
        t2v_params = dict(inv_t=1.0 / self.vlad_t2v_T,
                          prior_n=self.vlad_t2v_p * n,
                          inv_1mp=1.0 / (1.0 - self.vlad_t2v_p),
                          log_floor=-float(n) / self.vlad_t2v_T)
        v2t_params = dict(inv_t=1.0 / self.vlad_v2t_T,
                          prior_n=self.vlad_v2t_p * n,
                          inv_1mp=1.0 / (1.0 - self.vlad_v2t_p),
                          log_floor=-float(n) / self.vlad_v2t_T)
        per_c = _vlad_losses(quant_vlad_t2v_sims, quant_vlad_v2t_sims,
                             feat_vlad_t2v_sims, feat_vlad_v2t_sims,
                             code_vlad_t2v_sims, code_vlad_v2t_sims,
                             t2v_params, v2t_params)                     # (C, 6)
        quant_vlad_term = jnp.mean(per_c[:, 0] + per_c[:, 1])
        feat_vlad_term = jnp.mean(per_c[:, 2] + per_c[:, 3])
        code_vlad_term = jnp.mean(per_c[:, 4] + per_c[:, 5])

        # --- epoch-dependent mixing stays OUTSIDE the kernels ---------------
        sw = self.smoothing_schedule(epoch)
        cls_term = (quant_cls_term + code_cls_term * self.code_loss_weight) * (1 - sw) \
            + feat_cls_term * sw
        vlad_term = (quant_vlad_term + code_vlad_term * self.code_loss_weight) * (1 - sw) \
            + feat_vlad_term * sw
        return self.cls_loss_weight * cls_term + self.vlad_loss_weight * vlad_term


# ---------------------------------------------------------------------------
# Pure-JAX reference (mirrors the PyTorch math) for a correctness check
# ---------------------------------------------------------------------------
def _ref_ce(s, T):
    s = s / T
    lse = jax.scipy.special.logsumexp(s, axis=-1)
    diag = jnp.diagonal(s)
    return jnp.mean(lse - diag)


def _ref_debiased(sims, T, prior):
    b = sims.shape[-1]
    eye = jnp.eye(b, dtype=bool)
    probs = jnp.exp(sims / T)
    pos = jnp.sum(jnp.where(eye, probs, 0.0), axis=-1)
    neg = jnp.sum(jnp.where(eye, 0.0, probs), axis=-1)
    N = b - 1
    Ng = jnp.maximum((-prior * N * pos + neg) / (1.0 - prior), math.exp(-N / T))
    return jnp.mean(-jnp.log(pos / (pos + Ng)), axis=-1)


def _reference(loss_mod, args, epoch):
    (qct, qcv, qvt, qvv, fct, fcv, fvt, fvv, cct, ccv, cvt, cvv) = [
        a.astype(jnp.float32) for a in args]
    m = loss_mod
    quant_cls = _ref_ce(qct, m.cls_t2v_T) + _ref_ce(qcv, m.cls_v2t_T)
    code_cls = _ref_ce(cct, m.cls_t2v_T) + _ref_ce(ccv, m.cls_v2t_T)
    feat_cls = _ref_ce(fct, m.cls_t2v_T) + _ref_ce(fcv, m.cls_v2t_T)
    quant_vlad = jnp.mean(_ref_debiased(qvt, m.vlad_t2v_T, m.vlad_t2v_p)
                          + _ref_debiased(qvv, m.vlad_v2t_T, m.vlad_v2t_p))
    code_vlad = jnp.mean(_ref_debiased(cvt, m.vlad_t2v_T, m.vlad_t2v_p)
                         + _ref_debiased(cvv, m.vlad_v2t_T, m.vlad_v2t_p))
    feat_vlad = jnp.mean(_ref_debiased(fvt, m.vlad_t2v_T, m.vlad_t2v_p)
                         + _ref_debiased(fvv, m.vlad_v2t_T, m.vlad_v2t_p))
    sw = m._smoothing_weight_list[epoch]
    cls_term = (quant_cls + code_cls * m.code_loss_weight) * (1 - sw) + feat_cls * sw
    vlad_term = (quant_vlad + code_vlad * m.code_loss_weight) * (1 - sw) + feat_vlad * sw
    return m.cls_loss_weight * cls_term + m.vlad_loss_weight * vlad_term


# ---------------------------------------------------------------------------
if __name__ == "__main__":
    key = jax.random.PRNGKey(0)
    b, C, S = 8, 2, 4          # batch, num_clusters, num_subcodebooks

    shapes = [
        (b, b), (b, b),              # quant_cls_t2v / v2t
        (C, b, b), (C, b, b),        # quant_vlad_t2v / v2t
        (b, b), (b, b),              # feat_cls_t2v / v2t
        (C, b, b), (C, b, b),        # feat_vlad_t2v / v2t
        (b, b), (b, b),              # code_cls_t2v / v2t
        (C, S, b, b), (C, S, b, b),  # code_vlad_t2v / v2t
    ]
    keys = jax.random.split(key, len(shapes))
    args = [jax.random.normal(k, s, jnp.float32) for k, s in zip(keys, shapes)]
    epoch = 3

    loss_mod = HybridContrastiveLossPallas(
        cls_loss_hparams=dict(t2v_temperature=0.1, v2t_temperature=0.1),
        vlad_loss_hparams=dict(t2v_temperature=0.1, v2t_temperature=0.1,
                               t2v_debias_prior=0.1, v2t_debias_prior=0.1),
        cls_loss_weight=1.0,
        vlad_loss_weight=0.5,
        code_loss_weight=0.3,
        total_epochs=10,
        pq_reg_loss_weight=0.01,
    )

    out = loss_mod(*args, epoch=epoch)
    out = jax.block_until_ready(out)

    ref = jax.block_until_ready(_reference(loss_mod, args, epoch))
    assert jnp.allclose(out, ref, rtol=2e-3, atol=2e-3), (out, ref)

    print("KERNEL_OK")
</pallas_src>

<mosaic_0001>
module attributes {stable_mosaic.version = 11 : i64} {
  func.func @kernel(%arg0: i32, %arg1: memref<1x8x8xf32, #tpu.memory_space<vmem>>, %arg2: memref<1x8x8xf32, #tpu.memory_space<vmem>>, %arg3: memref<1x8x8xf32, #tpu.memory_space<vmem>>, %arg4: memref<1x8x8xf32, #tpu.memory_space<vmem>>, %arg5: memref<1x8x8xf32, #tpu.memory_space<vmem>>, %arg6: memref<1x8x8xf32, #tpu.memory_space<vmem>>, %arg7: memref<8x128xf32, #tpu.memory_space<vmem>>) attributes {dimension_semantics = [#tpu.dimension_semantics<arbitrary>], iteration_bounds = array<i64: 1>, scalar_prefetch = 0 : i64, scratch_operands = 0 : i64, tpu.core_type = #tpu.core_type<tc>, window_params = [{pipeline_mode = #tpu.pipeline_mode<synchronous>, transform_indices = @transform_0, window_bounds = array<i64: 1, 8, 8>}, {pipeline_mode = #tpu.pipeline_mode<synchronous>, transform_indices = @transform_1, window_bounds = array<i64: 1, 8, 8>}, {pipeline_mode = #tpu.pipeline_mode<synchronous>, transform_indices = @transform_2, window_bounds = array<i64: 1, 8, 8>}, {pipeline_mode = #tpu.pipeline_mode<synchronous>, transform_indices = @transform_3, window_bounds = array<i64: 1, 8, 8>}, {pipeline_mode = #tpu.pipeline_mode<synchronous>, transform_indices = @transform_4, window_bounds = array<i64: 1, 8, 8>}, {pipeline_mode = #tpu.pipeline_mode<synchronous>, transform_indices = @transform_5, window_bounds = array<i64: 1, 8, 8>}, {pipeline_mode = #tpu.pipeline_mode<synchronous>, transform_indices = @transform_6, window_bounds = array<i64: 8, 128>}]} {
    %c0 = arith.constant 0 : index
    %c0_0 = arith.constant 0 : index
    %c0_1 = arith.constant 0 : index
    %0 = vector.load %arg1[%c0, %c0_0, %c0_1] : memref<1x8x8xf32, #tpu.memory_space<vmem>>, vector<1x8x8xf32>
    %1 = tpu.iota {dimensions = array<i32: 0>} : vector<8x8xi32>
    %2 = tpu.iota {dimensions = array<i32: 1>} : vector<8x8xi32>
    %3 = arith.cmpi eq, %1, %2 : vector<8x8xi32>
    %cst = arith.constant dense<0xFF800000> : vector<1x8xf32>
    %4 = vector.multi_reduction <maximumf>, %0, %cst [2] : vector<1x8x8xf32> to vector<1x8xf32>
    %5 = vector.shape_cast %4 : vector<1x8xf32> to vector<1x8x1xf32>
    %cst_2 = arith.constant 0.000000e+00 : f32
    %6 = vector.shape_cast %3 : vector<8x8xi1> to vector<1x8x8xi1>
    %7 = vector.broadcast %cst_2 : f32 to vector<1x8x8xf32>
    %8 = arith.select %6, %0, %7 : vector<1x8x8xi1>, vector<1x8x8xf32>
    %cst_3 = arith.constant dense<0.000000e+00> : vector<1x8xf32>
    %9 = vector.multi_reduction <add>, %8, %cst_3 [2] : vector<1x8x8xf32> to vector<1x8xf32>
    %10 = vector.shape_cast %9 : vector<1x8xf32> to vector<1x8x1xf32>
    %cst_4 = arith.constant 1.000000e+01 : f32
    %11 = vector.broadcast %cst_4 : f32 to vector<1x8x1xf32>
    %12 = arith.mulf %5, %11 : vector<1x8x1xf32>
    %cst_5 = arith.constant 1.000000e+01 : f32
    %13 = vector.broadcast %cst_5 : f32 to vector<1x8x1xf32>
    %14 = arith.mulf %10, %13 : vector<1x8x1xf32>
    %15 = vector.broadcast %5 : vector<1x8x1xf32> to vector<1x8x8xf32>
    %16 = arith.subf %0, %15 : vector<1x8x8xf32>
    %cst_6 = arith.constant 1.000000e+01 : f32
    %17 = vector.broadcast %cst_6 : f32 to vector<1x8x8xf32>
    %18 = arith.mulf %16, %17 : vector<1x8x8xf32>
    %19 = math.exp %18 : vector<1x8x8xf32>
    %cst_7 = arith.constant dense<0.000000e+00> : vector<1x8xf32>
    %20 = vector.multi_reduction <add>, %19, %cst_7 [2] : vector<1x8x8xf32> to vector<1x8xf32>
    %21 = vector.shape_cast %20 : vector<1x8xf32> to vector<1x8x1xf32>
    %22 = math.log %21 : vector<1x8x1xf32>
    %23 = arith.addf %22, %12 : vector<1x8x1xf32>
    %24 = arith.subf %23, %14 : vector<1x8x1xf32>
    %25 = vector.shape_cast %24 : vector<1x8x1xf32> to vector<1x1x8x1xf32>
    %cst_8 = arith.constant dense<0.000000e+00> : vector<1xf32>
    %26 = vector.multi_reduction <add>, %25, %cst_8 [1, 2, 3] : vector<1x1x8x1xf32> to vector<1xf32>
    %27 = vector.shape_cast %26 : vector<1xf32> to vector<1x1x1x1xf32>
    %28 = vector.extract %27[0, 0, 0, 0] : f32 from vector<1x1x1x1xf32>
    %cst_9 = arith.constant 8.000000e+00 : f32
    %29 = arith.divf %28, %cst_9 : f32
    %c0_10 = arith.constant 0 : index
    %c0_11 = arith.constant 0 : index
    %c0_12 = arith.constant 0 : index
    %30 = vector.load %arg2[%c0_10, %c0_11, %c0_12] : memref<1x8x8xf32, #tpu.memory_space<vmem>>, vector<1x8x8xf32>
    %31 = tpu.iota {dimensions = array<i32: 0>} : vector<8x8xi32>
    %32 = tpu.iota {dimensions = array<i32: 1>} : vector<8x8xi32>
    %33 = arith.cmpi eq, %31, %32 : vector<8x8xi32>
    %cst_13 = arith.constant dense<0xFF800000> : vector<1x8xf32>
    %34 = vector.multi_reduction <maximumf>, %30, %cst_13 [2] : vector<1x8x8xf32> to vector<1x8xf32>
    %35 = vector.shape_cast %34 : vector<1x8xf32> to vector<1x8x1xf32>
    %cst_14 = arith.constant 0.000000e+00 : f32
    %36 = vector.shape_cast %33 : vector<8x8xi1> to vector<1x8x8xi1>
    %37 = vector.broadcast %cst_14 : f32 to vector<1x8x8xf32>
    %38 = arith.select %36, %30, %37 : vector<1x8x8xi1>, vector<1x8x8xf32>
    %cst_15 = arith.constant dense<0.000000e+00> : vector<1x8xf32>
    %39 = vector.multi_reduction <add>, %38, %cst_15 [2] : vector<1x8x8xf32> to vector<1x8xf32>
    %40 = vector.shape_cast %39 : vector<1x8xf32> to vector<1x8x1xf32>
    %cst_16 = arith.constant 1.000000e+01 : f32
    %41 = vector.broadcast %cst_16 : f32 to vector<1x8x1xf32>
    %42 = arith.mulf %35, %41 : vector<1x8x1xf32>
    %cst_17 = arith.constant 1.000000e+01 : f32
    %43 = vector.broadcast %cst_17 : f32 to vector<1x8x1xf32>
    %44 = arith.mulf %40, %43 : vector<1x8x1xf32>
    %45 = vector.broadcast %35 : vector<1x8x1xf32> to vector<1x8x8xf32>
    %46 = arith.subf %30, %45 : vector<1x8x8xf32>
    %cst_18 = arith.constant 1.000000e+01 : f32
    %47 = vector.broadcast %cst_18 : f32 to vector<1x8x8xf32>
    %48 = arith.mulf %46, %47 : vector<1x8x8xf32>
    %49 = math.exp %48 : vector<1x8x8xf32>
    %cst_19 = arith.constant dense<0.000000e+00> : vector<1x8xf32>
    %50 = vector.multi_reduction <add>, %49, %cst_19 [2] : vector<1x8x8xf32> to vector<1x8xf32>
    %51 = vector.shape_cast %50 : vector<1x8xf32> to vector<1x8x1xf32>
    %52 = math.log %51 : vector<1x8x1xf32>
    %53 = arith.addf %52, %42 : vector<1x8x1xf32>
    %54 = arith.subf %53, %44 : vector<1x8x1xf32>
    %55 = vector.shape_cast %54 : vector<1x8x1xf32> to vector<1x1x8x1xf32>
    %cst_20 = arith.constant dense<0.000000e+00> : vector<1xf32>
    %56 = vector.multi_reduction <add>, %55, %cst_20 [1, 2, 3] : vector<1x1x8x1xf32> to vector<1xf32>
    %57 = vector.shape_cast %56 : vector<1xf32> to vector<1x1x1x1xf32>
    %58 = vector.extract %57[0, 0, 0, 0] : f32 from vector<1x1x1x1xf32>
    %cst_21 = arith.constant 8.000000e+00 : f32
    %59 = arith.divf %58, %cst_21 : f32
    %c0_22 = arith.constant 0 : index
    %c0_23 = arith.constant 0 : index
    %c0_24 = arith.constant 0 : index
    %60 = vector.load %arg3[%c0_22, %c0_23, %c0_24] : memref<1x8x8xf32, #tpu.memory_space<vmem>>, vector<1x8x8xf32>
    %61 = tpu.iota {dimensions = array<i32: 0>} : vector<8x8xi32>
    %62 = tpu.iota {dimensions = array<i32: 1>} : vector<8x8xi32>
    %63 = arith.cmpi eq, %61, %62 : vector<8x8xi32>
    %cst_25 = arith.constant dense<0xFF800000> : vector<1x8xf32>
    %64 = vector.multi_reduction <maximumf>, %60, %cst_25 [2] : vector<1x8x8xf32> to vector<1x8xf32>
    %65 = vector.shape_cast %64 : vector<1x8xf32> to vector<1x8x1xf32>
    %cst_26 = arith.constant 0.000000e+00 : f32
    %66 = vector.shape_cast %63 : vector<8x8xi1> to vector<1x8x8xi1>
    %67 = vector.broadcast %cst_26 : f32 to vector<1x8x8xf32>
    %68 = arith.select %66, %60, %67 : vector<1x8x8xi1>, vector<1x8x8xf32>
    %cst_27 = arith.constant dense<0.000000e+00> : vector<1x8xf32>
    %69 = vector.multi_reduction <add>, %68, %cst_27 [2] : vector<1x8x8xf32> to vector<1x8xf32>
    %70 = vector.shape_cast %69 : vector<1x8xf32> to vector<1x8x1xf32>
    %cst_28 = arith.constant 1.000000e+01 : f32
    %71 = vector.broadcast %cst_28 : f32 to vector<1x8x1xf32>
    %72 = arith.mulf %65, %71 : vector<1x8x1xf32>
    %cst_29 = arith.constant 1.000000e+01 : f32
    %73 = vector.broadcast %cst_29 : f32 to vector<1x8x1xf32>
    %74 = arith.mulf %70, %73 : vector<1x8x1xf32>
    %75 = vector.broadcast %65 : vector<1x8x1xf32> to vector<1x8x8xf32>
    %76 = arith.subf %60, %75 : vector<1x8x8xf32>
    %cst_30 = arith.constant 1.000000e+01 : f32
    %77 = vector.broadcast %cst_30 : f32 to vector<1x8x8xf32>
    %78 = arith.mulf %76, %77 : vector<1x8x8xf32>
    %79 = math.exp %78 : vector<1x8x8xf32>
    %cst_31 = arith.constant dense<0.000000e+00> : vector<1x8xf32>
    %80 = vector.multi_reduction <add>, %79, %cst_31 [2] : vector<1x8x8xf32> to vector<1x8xf32>
    %81 = vector.shape_cast %80 : vector<1x8xf32> to vector<1x8x1xf32>
    %82 = math.log %81 : vector<1x8x1xf32>
    %83 = arith.addf %82, %72 : vector<1x8x1xf32>
    %84 = arith.subf %83, %74 : vector<1x8x1xf32>
    %85 = vector.shape_cast %84 : vector<1x8x1xf32> to vector<1x1x8x1xf32>
    %cst_32 = arith.constant dense<0.000000e+00> : vector<1xf32>
    %86 = vector.multi_reduction <add>, %85, %cst_32 [1, 2, 3] : vector<1x1x8x1xf32> to vector<1xf32>
    %87 = vector.shape_cast %86 : vector<1xf32> to vector<1x1x1x1xf32>
    %88 = vector.extract %87[0, 0, 0, 0] : f32 from vector<1x1x1x1xf32>
    %cst_33 = arith.constant 8.000000e+00 : f32
    %89 = arith.divf %88, %cst_33 : f32
    %c0_34 = arith.constant 0 : index
    %c0_35 = arith.constant 0 : index
    %c0_36 = arith.constant 0 : index
    %90 = vector.load %arg4[%c0_34, %c0_35, %c0_36] : memref<1x8x8xf32, #tpu.memory_space<vmem>>, vector<1x8x8xf32>
    %91 = tpu.iota {dimensions = array<i32: 0>} : vector<8x8xi32>
    %92 = tpu.iota {dimensions = array<i32: 1>} : vector<8x8xi32>
    %93 = arith.cmpi eq, %91, %92 : vector<8x8xi32>
    %cst_37 = arith.constant dense<0xFF800000> : vector<1x8xf32>
    %94 = vector.multi_reduction <maximumf>, %90, %cst_37 [2] : vector<1x8x8xf32> to vector<1x8xf32>
    %95 = vector.shape_cast %94 : vector<1x8xf32> to vector<1x8x1xf32>
    %cst_38 = arith.constant 0.000000e+00 : f32
    %96 = vector.shape_cast %93 : vector<8x8xi1> to vector<1x8x8xi1>
    %97 = vector.broadcast %cst_38 : f32 to vector<1x8x8xf32>
    %98 = arith.select %96, %90, %97 : vector<1x8x8xi1>, vector<1x8x8xf32>
    %cst_39 = arith.constant dense<0.000000e+00> : vector<1x8xf32>
    %99 = vector.multi_reduction <add>, %98, %cst_39 [2] : vector<1x8x8xf32> to vector<1x8xf32>
    %100 = vector.shape_cast %99 : vector<1x8xf32> to vector<1x8x1xf32>
    %cst_40 = arith.constant 1.000000e+01 : f32
    %101 = vector.broadcast %cst_40 : f32 to vector<1x8x1xf32>
    %102 = arith.mulf %95, %101 : vector<1x8x1xf32>
    %cst_41 = arith.constant 1.000000e+01 : f32
    %103 = vector.broadcast %cst_41 : f32 to vector<1x8x1xf32>
    %104 = arith.mulf %100, %103 : vector<1x8x1xf32>
    %105 = vector.broadcast %95 : vector<1x8x1xf32> to vector<1x8x8xf32>
    %106 = arith.subf %90, %105 : vector<1x8x8xf32>
    %cst_42 = arith.constant 1.000000e+01 : f32
    %107 = vector.broadcast %cst_42 : f32 to vector<1x8x8xf32>
    %108 = arith.mulf %106, %107 : vector<1x8x8xf32>
    %109 = math.exp %108 : vector<1x8x8xf32>
    %cst_43 = arith.constant dense<0.000000e+00> : vector<1x8xf32>
    %110 = vector.multi_reduction <add>, %109, %cst_43 [2] : vector<1x8x8xf32> to vector<1x8xf32>
    %111 = vector.shape_cast %110 : vector<1x8xf32> to vector<1x8x1xf32>
    %112 = math.log %111 : vector<1x8x1xf32>
    %113 = arith.addf %112, %102 : vector<1x8x1xf32>
    %114 = arith.subf %113, %104 : vector<1x8x1xf32>
    %115 = vector.shape_cast %114 : vector<1x8x1xf32> to vector<1x1x8x1xf32>
    %cst_44 = arith.constant dense<0.000000e+00> : vector<1xf32>
    %116 = vector.multi_reduction <add>, %115, %cst_44 [1, 2, 3] : vector<1x1x8x1xf32> to vector<1xf32>
    %117 = vector.shape_cast %116 : vector<1xf32> to vector<1x1x1x1xf32>
    %118 = vector.extract %117[0, 0, 0, 0] : f32 from vector<1x1x1x1xf32>
    %cst_45 = arith.constant 8.000000e+00 : f32
    %119 = arith.divf %118, %cst_45 : f32
    %c0_46 = arith.constant 0 : index
    %c0_47 = arith.constant 0 : index
    %c0_48 = arith.constant 0 : index
    %120 = vector.load %arg5[%c0_46, %c0_47, %c0_48] : memref<1x8x8xf32, #tpu.memory_space<vmem>>, vector<1x8x8xf32>
    %121 = tpu.iota {dimensions = array<i32: 0>} : vector<8x8xi32>
    %122 = tpu.iota {dimensions = array<i32: 1>} : vector<8x8xi32>
    %123 = arith.cmpi eq, %121, %122 : vector<8x8xi32>
    %cst_49 = arith.constant dense<0xFF800000> : vector<1x8xf32>
    %124 = vector.multi_reduction <maximumf>, %120, %cst_49 [2] : vector<1x8x8xf32> to vector<1x8xf32>
    %125 = vector.shape_cast %124 : vector<1x8xf32> to vector<1x8x1xf32>
    %cst_50 = arith.constant 0.000000e+00 : f32
    %126 = vector.shape_cast %123 : vector<8x8xi1> to vector<1x8x8xi1>
    %127 = vector.broadcast %cst_50 : f32 to vector<1x8x8xf32>
    %128 = arith.select %126, %120, %127 : vector<1x8x8xi1>, vector<1x8x8xf32>
    %cst_51 = arith.constant dense<0.000000e+00> : vector<1x8xf32>
    %129 = vector.multi_reduction <add>, %128, %cst_51 [2] : vector<1x8x8xf32> to vector<1x8xf32>
    %130 = vector.shape_cast %129 : vector<1x8xf32> to vector<1x8x1xf32>
    %cst_52 = arith.constant 1.000000e+01 : f32
    %131 = vector.broadcast %cst_52 : f32 to vector<1x8x1xf32>
    %132 = arith.mulf %125, %131 : vector<1x8x1xf32>
    %cst_53 = arith.constant 1.000000e+01 : f32
    %133 = vector.broadcast %cst_53 : f32 to vector<1x8x1xf32>
    %134 = arith.mulf %130, %133 : vector<1x8x1xf32>
    %135 = vector.broadcast %125 : vector<1x8x1xf32> to vector<1x8x8xf32>
    %136 = arith.subf %120, %135 : vector<1x8x8xf32>
    %cst_54 = arith.constant 1.000000e+01 : f32
    %137 = vector.broadcast %cst_54 : f32 to vector<1x8x8xf32>
    %138 = arith.mulf %136, %137 : vector<1x8x8xf32>
    %139 = math.exp %138 : vector<1x8x8xf32>
    %cst_55 = arith.constant dense<0.000000e+00> : vector<1x8xf32>
    %140 = vector.multi_reduction <add>, %139, %cst_55 [2] : vector<1x8x8xf32> to vector<1x8xf32>
    %141 = vector.shape_cast %140 : vector<1x8xf32> to vector<1x8x1xf32>
    %142 = math.log %141 : vector<1x8x1xf32>
    %143 = arith.addf %142, %132 : vector<1x8x1xf32>
    %144 = arith.subf %143, %134 : vector<1x8x1xf32>
    %145 = vector.shape_cast %144 : vector<1x8x1xf32> to vector<1x1x8x1xf32>
    %cst_56 = arith.constant dense<0.000000e+00> : vector<1xf32>
    %146 = vector.multi_reduction <add>, %145, %cst_56 [1, 2, 3] : vector<1x1x8x1xf32> to vector<1xf32>
    %147 = vector.shape_cast %146 : vector<1xf32> to vector<1x1x1x1xf32>
    %148 = vector.extract %147[0, 0, 0, 0] : f32 from vector<1x1x1x1xf32>
    %cst_57 = arith.constant 8.000000e+00 : f32
    %149 = arith.divf %148, %cst_57 : f32
    %c0_58 = arith.constant 0 : index
    %c0_59 = arith.constant 0 : index
    %c0_60 = arith.constant 0 : index
    %150 = vector.load %arg6[%c0_58, %c0_59, %c0_60] : memref<1x8x8xf32, #tpu.memory_space<vmem>>, vector<1x8x8xf32>
    %151 = tpu.iota {dimensions = array<i32: 0>} : vector<8x8xi32>
    %152 = tpu.iota {dimensions = array<i32: 1>} : vector<8x8xi32>
    %153 = arith.cmpi eq, %151, %152 : vector<8x8xi32>
    %cst_61 = arith.constant dense<0xFF800000> : vector<1x8xf32>
    %154 = vector.multi_reduction <maximumf>, %150, %cst_61 [2] : vector<1x8x8xf32> to vector<1x8xf32>
    %155 = vector.shape_cast %154 : vector<1x8xf32> to vector<1x8x1xf32>
    %cst_62 = arith.constant 0.000000e+00 : f32
    %156 = vector.shape_cast %153 : vector<8x8xi1> to vector<1x8x8xi1>
    %157 = vector.broadcast %cst_62 : f32 to vector<1x8x8xf32>
    %158 = arith.select %156, %150, %157 : vector<1x8x8xi1>, vector<1x8x8xf32>
    %cst_63 = arith.constant dense<0.000000e+00> : vector<1x8xf32>
    %159 = vector.multi_reduction <add>, %158, %cst_63 [2] : vector<1x8x8xf32> to vector<1x8xf32>
    %160 = vector.shape_cast %159 : vector<1x8xf32> to vector<1x8x1xf32>
    %cst_64 = arith.constant 1.000000e+01 : f32
    %161 = vector.broadcast %cst_64 : f32 to vector<1x8x1xf32>
    %162 = arith.mulf %155, %161 : vector<1x8x1xf32>
    %cst_65 = arith.constant 1.000000e+01 : f32
    %163 = vector.broadcast %cst_65 : f32 to vector<1x8x1xf32>
    %164 = arith.mulf %160, %163 : vector<1x8x1xf32>
    %165 = vector.broadcast %155 : vector<1x8x1xf32> to vector<1x8x8xf32>
    %166 = arith.subf %150, %165 : vector<1x8x8xf32>
    %cst_66 = arith.constant 1.000000e+01 : f32
    %167 = vector.broadcast %cst_66 : f32 to vector<1x8x8xf32>
    %168 = arith.mulf %166, %167 : vector<1x8x8xf32>
    %169 = math.exp %168 : vector<1x8x8xf32>
    %cst_67 = arith.constant dense<0.000000e+00> : vector<1x8xf32>
    %170 = vector.multi_reduction <add>, %169, %cst_67 [2] : vector<1x8x8xf32> to vector<1x8xf32>
    %171 = vector.shape_cast %170 : vector<1x8xf32> to vector<1x8x1xf32>
    %172 = math.log %171 : vector<1x8x1xf32>
    %173 = arith.addf %172, %162 : vector<1x8x1xf32>
    %174 = arith.subf %173, %164 : vector<1x8x1xf32>
    %175 = vector.shape_cast %174 : vector<1x8x1xf32> to vector<1x1x8x1xf32>
    %cst_68 = arith.constant dense<0.000000e+00> : vector<1xf32>
    %176 = vector.multi_reduction <add>, %175, %cst_68 [1, 2, 3] : vector<1x1x8x1xf32> to vector<1xf32>
    %177 = vector.shape_cast %176 : vector<1xf32> to vector<1x1x1x1xf32>
    %178 = vector.extract %177[0, 0, 0, 0] : f32 from vector<1x1x1x1xf32>
    %cst_69 = arith.constant 8.000000e+00 : f32
    %179 = arith.divf %178, %cst_69 : f32
    %180 = tpu.iota {dimensions = array<i32: 0>} : vector<8x128xi32>
    %cst_70 = arith.constant 0.000000e+00 : f32
    %181 = vector.broadcast %cst_70 : f32 to vector<8x128xf32>
    %c0_i32 = arith.constant 0 : i32
    %182 = vector.broadcast %c0_i32 : i32 to vector<8x128xi32>
    %183 = arith.cmpi eq, %180, %182 : vector<8x128xi32>
    %cst_71 = arith.constant 0.000000e+00 : f32
    %184 = vector.broadcast %29 : f32 to vector<8x128xf32>
    %185 = vector.broadcast %cst_71 : f32 to vector<8x128xf32>
    %186 = arith.select %183, %184, %185 : vector<8x128xi1>, vector<8x128xf32>
    %187 = arith.addf %181, %186 : vector<8x128xf32>
    %c1_i32 = arith.constant 1 : i32
    %188 = vector.broadcast %c1_i32 : i32 to vector<8x128xi32>
    %189 = arith.cmpi eq, %180, %188 : vector<8x128xi32>
    %cst_72 = arith.constant 0.000000e+00 : f32
    %190 = vector.broadcast %59 : f32 to vector<8x128xf32>
    %191 = vector.broadcast %cst_72 : f32 to vector<8x128xf32>
    %192 = arith.select %189, %190, %191 : vector<8x128xi1>, vector<8x128xf32>
    %193 = arith.addf %187, %192 : vector<8x128xf32>
    %c2_i32 = arith.constant 2 : i32
    %194 = vector.broadcast %c2_i32 : i32 to vector<8x128xi32>
    %195 = arith.cmpi eq, %180, %194 : vector<8x128xi32>
    %cst_73 = arith.constant 0.000000e+00 : f32
    %196 = vector.broadcast %89 : f32 to vector<8x128xf32>
    %197 = vector.broadcast %cst_73 : f32 to vector<8x128xf32>
    %198 = arith.select %195, %196, %197 : vector<8x128xi1>, vector<8x128xf32>
    %199 = arith.addf %193, %198 : vector<8x128xf32>
    %c3_i32 = arith.constant 3 : i32
    %200 = vector.broadcast %c3_i32 : i32 to vector<8x128xi32>
    %201 = arith.cmpi eq, %180, %200 : vector<8x128xi32>
    %cst_74 = arith.constant 0.000000e+00 : f32
    %202 = vector.broadcast %119 : f32 to vector<8x128xf32>
    %203 = vector.broadcast %cst_74 : f32 to vector<8x128xf32>
    %204 = arith.select %201, %202, %203 : vector<8x128xi1>, vector<8x128xf32>
    %205 = arith.addf %199, %204 : vector<8x128xf32>
    %c4_i32 = arith.constant 4 : i32
    %206 = vector.broadcast %c4_i32 : i32 to vector<8x128xi32>
    %207 = arith.cmpi eq, %180, %206 : vector<8x128xi32>
    %cst_75 = arith.constant 0.000000e+00 : f32
    %208 = vector.broadcast %149 : f32 to vector<8x128xf32>
    %209 = vector.broadcast %cst_75 : f32 to vector<8x128xf32>
    %210 = arith.select %207, %208, %209 : vector<8x128xi1>, vector<8x128xf32>
    %211 = arith.addf %205, %210 : vector<8x128xf32>
    %c5_i32 = arith.constant 5 : i32
    %212 = vector.broadcast %c5_i32 : i32 to vector<8x128xi32>
    %213 = arith.cmpi eq, %180, %212 : vector<8x128xi32>
    %cst_76 = arith.constant 0.000000e+00 : f32
    %214 = vector.broadcast %179 : f32 to vector<8x128xf32>
    %215 = vector.broadcast %cst_76 : f32 to vector<8x128xf32>
    %216 = arith.select %213, %214, %215 : vector<8x128xi1>, vector<8x128xf32>
    %217 = arith.addf %211, %216 : vector<8x128xf32>
    %c0_77 = arith.constant 0 : index
    %c0_78 = arith.constant 0 : index
    %218 = vector.load %arg7[%c0_77, %c0_78] : memref<8x128xf32, #tpu.memory_space<vmem>>, vector<8x128xf32>
    tpu.vector_store %arg7[%c0_77, %c0_78], %217 {strides = array<i32>} : memref<8x128xf32, #tpu.memory_space<vmem>>, vector<8x128xf32>,
    return
  }
  func.func @transform_0(%arg0: i32) -> (i32, i32, i32) {
    %c0_i32 = arith.constant 0 : i32
    %c0_i32_0 = arith.constant 0 : i32
    %c0_i32_1 = arith.constant 0 : i32
    %c0_i32_2 = arith.constant 0 : i32
    return %c0_i32, %c0_i32_0, %c0_i32_1 : i32, i32, i32
  }
  func.func @transform_1(%arg0: i32) -> (i32, i32, i32) {
    %c0_i32 = arith.constant 0 : i32
    %c0_i32_0 = arith.constant 0 : i32
    %c0_i32_1 = arith.constant 0 : i32
    %c0_i32_2 = arith.constant 0 : i32
    return %c0_i32, %c0_i32_0, %c0_i32_1 : i32, i32, i32
  }
  func.func @transform_2(%arg0: i32) -> (i32, i32, i32) {
    %c0_i32 = arith.constant 0 : i32
    %c0_i32_0 = arith.constant 0 : i32
    %c0_i32_1 = arith.constant 0 : i32
    %c0_i32_2 = arith.constant 0 : i32
    return %c0_i32, %c0_i32_0, %c0_i32_1 : i32, i32, i32
  }
  func.func @transform_3(%arg0: i32) -> (i32, i32, i32) {
    %c0_i32 = arith.constant 0 : i32
    %c0_i32_0 = arith.constant 0 : i32
    %c0_i32_1 = arith.constant 0 : i32
    %c0_i32_2 = arith.constant 0 : i32
    return %c0_i32, %c0_i32_0, %c0_i32_1 : i32, i32, i32
  }
  func.func @transform_4(%arg0: i32) -> (i32, i32, i32) {
    %c0_i32 = arith.constant 0 : i32
    %c0_i32_0 = arith.constant 0 : i32
    %c0_i32_1 = arith.constant 0 : i32
    %c0_i32_2 = arith.constant 0 : i32
    return %c0_i32, %c0_i32_0, %c0_i32_1 : i32, i32, i32
  }
  func.func @transform_5(%arg0: i32) -> (i32, i32, i32) {
    %c0_i32 = arith.constant 0 : i32
    %c0_i32_0 = arith.constant 0 : i32
    %c0_i32_1 = arith.constant 0 : i32
    %c0_i32_2 = arith.constant 0 : i32
    return %c0_i32, %c0_i32_0, %c0_i32_1 : i32, i32, i32
  }
  func.func @transform_6(%arg0: i32) -> (i32, i32) {
    %c0_i32 = arith.constant 0 : i32
    %c0_i32_0 = arith.constant 0 : i32
    %c0_i32_1 = arith.constant 0 : i32
    return %c0_i32, %c0_i32_0 : i32, i32
  }
}

</mosaic_0001>

<bundles_post_ra>
// kernel: tpu_custom_call.1
= control target key start
LH: loop header
LB: loop body
LE: loop exit
PB: predicated region body
PF: predicated region fallthrough
CT: control target
= control target key end

     0   :  { %11 = vsyncpa [#allocation3], 0  ;;  %s799_s0 = inlined_call_operand.hbm [shape: f32[1,8,8], index: 0, kind: input, shape index: {}]   ;;  %s800_s1 = inlined_call_operand.hbm [shape: f32[1,8,8], index: 1, kind: input, shape index: {}]   ;;  %s801_s2 = inlined_call_operand.hbm [shape: f32[1,8,8], index: 2, kind: input, shape index: {}]   ;;  %s802_s3 = inlined_call_operand.hbm [shape: f32[1,8,8], index: 3, kind: input, shape index: {}]   ;;  %s803_s4 = inlined_call_operand.hbm [shape: f32[1,8,8], index: 4, kind: input, shape index: {}]   ;;  %s804_s5 = inlined_call_operand.hbm [shape: f32[1,8,8], index: 5, kind: input, shape index: {}]   ;;  %s805_s6 = inlined_call_operand.hbm [shape: f32[8,128], index: 6, kind: output, shape index: {}]  }
   0x1   :  { %12 = vsyncpa [#allocation6], 0 }
   0x2   :  { %13 = vsyncpa [#allocation9], 0 }
   0x3   :  { %14 = vsyncpa [#allocation12], 0  ;;  %s32_s23 = sshll.u32 %s800_s1, 4  ;;  %s33_s23 = int_to_ptr.hbm [resolvable:$true] %s32_s23 }
   0x4   :  { %15 = vsyncpa [#allocation4], 0  ;;  %s624_s24 = smov [#allocation5]   ;;  %s54_s28 = sshll.u32 %s802_s3, 4  ;;  %s55_s28 = int_to_ptr.hbm [resolvable:$true] %s54_s28 }
   0x5   :  { %s34_s25 = sshll.u32 %s624_s24, 4  ;;  %s625_s29 = smov [#allocation8]   ;;  %s35_s25 = int_to_ptr.vmem [resolvable:$true] %s34_s25 }
   0x6   :  { %37 = dma.hbm_to_vmem [thread:$0]  %s33_s23, 128, %s35_s25, [#allocation6]  }
   0x7   :  { %s56_s30 = sshll.u32 %s625_s29, 4  ;;  %s21_s9 = sshll.u32 %s799_s0, 4  ;;  %s57_s30 = int_to_ptr.vmem [resolvable:$true] %s56_s30  ;;  %s22_s9 = int_to_ptr.hbm [resolvable:$true] %s21_s9 }
   0x8   :  { %59 = dma.hbm_to_vmem [thread:$0]  %s55_s28, 128, %s57_s30, [#allocation9]  }
   0x9   :  { %s43_s11 = sshll.u32 %s801_s2, 4  ;;  %s626_s12 = smov [#allocation2]   ;;  %s44_s11 = int_to_ptr.hbm [resolvable:$true] %s43_s11 }
   0xa   :  { %s23_s13 = sshll.u32 %s626_s12, 4  ;;  %s627_s3 = smov [#allocation7]   ;;  %s24_s13 = int_to_ptr.vmem [resolvable:$true] %s23_s13 }
   0xb   :  { %26 = dma.hbm_to_vmem [thread:$0]  %s22_s9, 128, %s24_s13, [#allocation3]  }
   0xc   :  { %s45_s14 = sshll.u32 %s627_s3, 4  ;;  %s65_s17 = sshll.u32 %s803_s4, 4  ;;  %s46_s14 = int_to_ptr.vmem [resolvable:$true] %s45_s14  ;;  %s66_s17 = int_to_ptr.hbm [resolvable:$true] %s65_s17 }
   0xd   :  { %48 = dma.hbm_to_vmem [thread:$0]  %s44_s11, 128, %s46_s14, [#allocation6]  }
   0xe   :  { %s76_s19 = sshll.u32 %s804_s5, 4  ;;  %s628_s20 = smov [#allocation10]   ;;  %s77_s19 = int_to_ptr.hbm [resolvable:$true] %s76_s19 }
   0xf   :  { %s67_s2 = sshll.u32 %s628_s20, 4  ;;  %s629_s21 = smov [#allocation11]   ;;  %s68_s2 = int_to_ptr.vmem [resolvable:$true] %s67_s2 }
  0x10   :  { %70 = dma.hbm_to_vmem [thread:$0]  %s66_s17, 128, %s68_s2, [#allocation9]  }
  0x11   :  { %s78_s22 = sshll.u32 %s629_s21, 4  ;;  %s79_s22 = int_to_ptr.vmem [resolvable:$true] %s78_s22 }
  0x12   :  { %81 = dma.hbm_to_vmem [thread:$0]  %s77_s19, 128, %s79_s22, [#allocation12]  }
  0x13   :  { %614 = dma.done.wait [#allocation3], 128  }
  0x14   :  { %615 = vsyncadd [#allocation3], 4294967168 }
  0x15   :  { %616 = dma.done.wait [#allocation6], 256  }
  0x16   :  { %617 = vsyncadd [#allocation6], 4294967040 }
  0x17   :  { %618 = dma.done.wait [#allocation9], 256  }
  0x18   :  { %619 = vsyncadd [#allocation9], 4294967040 }
  0x19   :  { %620 = dma.done.wait [#allocation12], 128  }
  0x1a   :  { %621 = vsyncadd [#allocation12], 4294967168  ;;  %vm112_vm0 = vcmask 64512   ;;  %v685_v0 = vld [vmem:[#allocation10] sm:$0xff]  ;;  %v687_v1 = vld [vmem:[#allocation7] sm:$0xff]  ;;  %v107_v38 = vlaneseq  ;;  %vm133_vm2 = vcmask 7168  }
  0x1b   :  { %v689_v2 = vld [vmem:[#allocation2] sm:$0xff]  ;;  %v274_v3 = vsel %vm112_vm0, %v685_v0, -inf  ;;  %v194_v4 = vsel %vm112_vm0, %v687_v1, -inf  ;;  %v697_v6 = vld [vmem:[#allocation11] sm:$0xff]  ;;  %v699_v7 = vld [vmem:[#allocation8] sm:$0xff]  ;;  %s631_s1 = smov [#allocation13]  }
  0x1c   :  { %v113_v5 = vsel %vm112_vm0, %v689_v2, -inf  ;;  %275 = vmax.xlane.f32.xlu2 %v274_v3  ;;  %195 = vmax.xlane.f32.xlu1 %v194_v4  ;;  %v701_v8 = vld [vmem:[#allocation5] sm:$0xff]  ;;  %v314_v9 = vsel %vm112_vm0, %v697_v6, -inf  ;;  %v234_v10 = vsel %vm112_vm0, %v699_v7, -inf  ;;  %v735_v41 = vshrl.u32 %v107_v38, 7  ;;  %s383_s10 = sshll.u32 %s631_s1, 4  ;;  %s384_s10 = int_to_ptr.vmem [resolvable:$true] %s383_s10 }
  0x1d   :  { %114 = vmax.xlane.f32.xlu0 %v113_v5  ;;  %v154_v11 = vsel %vm112_vm0, %v701_v8, -inf  ;;  %v110_v42 = vand.u32 127, %v107_v38  ;;  %s385_s13 = sshll.u32 %s805_s6, 4  ;;  %s386_s13 = int_to_ptr.hbm [resolvable:$true] %s385_s13 }
  0x1e   :  { %vm353_vm4 = vcmp.eq.s32.totalorder %v735_v41, 0  ;;  %vm357_vm5 = vcmp.eq.s32.totalorder %v735_v41, 1  ;;  %vm361_vm6 = vcmp.eq.s32.totalorder %v735_v41, 2  ;;  %vm365_vm7 = vcmp.eq.s32.totalorder %v735_v41, 3 }
  0x1f   :  { %vm740_vm1 = vcmp.eq.s32.totalorder %v735_v41, %v110_v42  ;;  %vm369_vm8 = vcmp.eq.s32.totalorder %v735_v41, 4  ;;  %vm373_vm9 = vcmp.eq.s32.totalorder %v735_v41, 5 }
  0x20   :  { %v197_v50 = vsel %vm740_vm1, %v687_v1, 0.0  ;;  %v116_v51 = vsel %vm740_vm1, %v689_v2, 0.0  ;;  %v317_v56 = vsel %vm740_vm1, %v697_v6, 0.0  ;;  %v237_v57 = vsel %vm740_vm1, %v699_v7, 0.0 }
  0x21   :  { %v198_v53 = vsel %vm112_vm0, %v197_v50, 0.0  ;;  %v117_v54 = vsel %vm112_vm0, %v116_v51, 0.0  ;;  %v157_v58 = vsel %vm740_vm1, %v701_v8, 0.0  ;;  %v318_v59 = vsel %vm112_vm0, %v317_v56, 0.0 }
  0x22   :  { %v238_v60 = vsel %vm112_vm0, %v237_v57, 0.0  ;;  %v158_v61 = vsel %vm112_vm0, %v157_v58, 0.0  ;;  %v277_v62 = vsel %vm740_vm1, %v685_v0, 0.0  ;;  %v630_v56 = vmov 8.0  }
  0x23   :  { %v278_v63 = vsel %vm112_vm0, %v277_v62, 0.0 }
  0x24   :  { %315 = vmax.xlane.f32.xlu2 %v314_v9  ;;  %235 = vmax.xlane.f32.xlu1 %v234_v10 }
  0x25   :  { %155 = vmax.xlane.f32.xlu0 %v154_v11 }
  0x8f   :  { %v709_v12 = vpop.xlane.xlu2 %275  ;;  %v711_v13 = vpop.xlane.xlu1 %195 }
  0x90   :  { %v203_v14 = vsub.f32 %v687_v1, %v711_v13  ;;  %v715_v15 = vpop.xlane.xlu0 %114  ;;  %v283_v27 = vsub.f32 %v685_v0, %v709_v12  ;;  %v201_v10 = vmul.f32 10.0, %v711_v13  ;;  %v281_v50 = vmul.f32 10.0, %v709_v12 }
  0x91   :  { %v122_v16 = vsub.f32 %v689_v2, %v715_v15  ;;  %v120_v0 = vmul.f32 10.0, %v715_v15 }
  0x92   :  { %v204_v17 = vmul.f32 10.0, %v203_v14  ;;  %v284_v36 = vmul.f32 10.0, %v283_v27 }
  0x93   :  { %v123_v18 = vmul.f32 10.0, %v122_v16 }
  0x94   :  { %v205_v19 = vmul.f32 1.442695, %v204_v17  ;;  %v285_v40 = vmul.f32 1.442695, %v284_v36 }
  0x95   :  { %v124_v20 = vmul.f32 1.442695, %v123_v18 }
  0x96   :  { %420 = vpow2.f32 %v205_v19 }
  0x97   :  { %v719_v21 = vpop.xlane.xlu2 %315  ;;  %v721_v22 = vpop.xlane.xlu1 %235  ;;  %422 = vpow2.f32 %v124_v20 }
  0x98   :  { %v323_v23 = vsub.f32 %v697_v6, %v719_v21  ;;  %v725_v24 = vpop.xlane.xlu0 %155  ;;  %v243_v25 = vsub.f32 %v699_v7, %v721_v22 }
  0x99   :  { %v163_v26 = vsub.f32 %v701_v8, %v725_v24 }
  0x9a   :  { %v324_v28 = vmul.f32 10.0, %v323_v23  ;;  %v244_v29 = vmul.f32 10.0, %v243_v25 }
  0x9b   :  { %v164_v30 = vmul.f32 10.0, %v163_v26 }
  0x9c   :  { %v325_v31 = vmul.f32 1.442695, %v324_v28  ;;  %v421_v32 = vpop.eup %420  ;;  %v245_v33 = vmul.f32 1.442695, %v244_v29 }
  0x9d   :  { %v165_v34 = vmul.f32 1.442695, %v164_v30  ;;  %v423_v35 = vpop.eup %422  ;;  %v207_v37 = vsel %vm112_vm0, %v421_v32, 0.0  ;;  %v321_v32 = vmul.f32 10.0, %v719_v21 }
  0x9e   :  { %424 = vpow2.f32 %v325_v31  ;;  %208 = vadd.xlane.f32.xlu2 %v207_v37  ;;  %v126_v39 = vsel %vm112_vm0, %v423_v35, 0.0 }
  0x9f   :  { %426 = vpow2.f32 %v245_v33  ;;  %127 = vadd.xlane.f32.xlu0 %v126_v39  ;;  %v241_v33 = vmul.f32 10.0, %v721_v22 }
  0xa0   :  { %428 = vpow2.f32 %v165_v34  ;;  %v161_v34 = vmul.f32 10.0, %v725_v24 }
  0xa1   :  { %430 = vpow2.f32 %v285_v40 }
  0xa4   :  { %v425_v43 = vpop.eup %424 }
  0xa5   :  { %v427_v44 = vpop.eup %426  ;;  %v327_v45 = vsel %vm112_vm0, %v425_v43, 0.0 }
  0xa6   :  { %v429_v46 = vpop.eup %428  ;;  %v247_v47 = vsel %vm112_vm0, %v427_v44, 0.0  ;;  %328 = vadd.xlane.f32.xlu2 %v327_v45 }
  0xa7   :  { %v167_v49 = vsel %vm112_vm0, %v429_v46, 0.0  ;;  %248 = vadd.xlane.f32.xlu0 %v247_v47  ;;  %v431_v52 = vpop.eup %430 }
  0xa8   :  { %168 = vadd.xlane.f32.xlu1 %v167_v49  ;;  %v287_v55 = vsel %vm112_vm0, %v431_v52, 0.0 }
  0xae   :  { %199 = vadd.xlane.f32.xlu2 %v198_v53 }
  0xaf   :  { %118 = vadd.xlane.f32.xlu0 %v117_v54 }
  0xb0   :  { %288 = vadd.xlane.f32.xlu1 %v287_v55 }
  0xb6   :  { %319 = vadd.xlane.f32.xlu2 %v318_v59 }
  0xb7   :  { %239 = vadd.xlane.f32.xlu0 %v238_v60 }
  0xb8   :  { %159 = vadd.xlane.f32.xlu1 %v158_v61 }
  0xc0   :  { %279 = vadd.xlane.f32.xlu1 %v278_v63 }
 0x111   :  { %v209_v1 = vpop.xlane.xlu2 %208 }
 0x112   :  { %v128_v2 = vpop.xlane.xlu0 %127  ;;  %432 = vlog2.f32 %v209_v1 }
 0x113   :  { %434 = vlog2.f32 %v128_v2 }
 0x118   :  { %v433_v6 = vpop.eup %432 }
 0x119   :  { %v329_v3 = vpop.xlane.xlu2 %328  ;;  %v435_v7 = vpop.eup %434  ;;  %v211_v8 = vmul.f32 0.6931472, %v433_v6 }
 0x11a   :  { %v249_v5 = vpop.xlane.xlu0 %248  ;;  %436 = vlog2.f32 %v329_v3  ;;  %v130_v9 = vmul.f32 0.6931472, %v435_v7 }
 0x11b   :  { %v169_v4 = vpop.xlane.xlu1 %168  ;;  %v212_v16 = vadd.f32 %v211_v8, %v201_v10 }
 0x11c   :  { %438 = vlog2.f32 %v169_v4  ;;  %v131_v23 = vadd.f32 %v130_v9, %v120_v0 }
 0x11d   :  { %440 = vlog2.f32 %v249_v5 }
 0x120   :  { %v437_v14 = vpop.eup %436 }
 0x121   :  { %v200_v11 = vpop.xlane.xlu2 %199  ;;  %v331_v29 = vmul.f32 0.6931472, %v437_v14 }
 0x122   :  { %v202_v17 = vmul.f32 10.0, %v200_v11  ;;  %v119_v19 = vpop.xlane.xlu0 %118  ;;  %v439_v20 = vpop.eup %438 }
 0x123   :  { %v289_v18 = vpop.xlane.xlu1 %288  ;;  %v121_v25 = vmul.f32 10.0, %v119_v19  ;;  %v441_v26 = vpop.eup %440  ;;  %v171_v13 = vmul.f32 0.6931472, %v439_v20  ;;  %v332_v36 = vadd.f32 %v331_v29, %v321_v32 }
 0x124   :  { %v213_v27 = vsub.f32 %v212_v16, %v202_v17  ;;  %442 = vlog2.f32 %v289_v18  ;;  %v251_v31 = vmul.f32 0.6931472, %v441_v26 }
 0x125   :  { %v132_v28 = vsub.f32 %v131_v23, %v121_v25  ;;  %v172_v40 = vadd.f32 %v171_v13, %v161_v34  ;;  %444 = vrcp.f32 %v630_v56 }
 0x126   :  { %v214_v30 = vsel %vm133_vm2, %v213_v27, 0.0  ;;  %v252_v42 = vadd.f32 %v251_v31, %v241_v33 }
 0x127   :  { %215 = vadd.xlane.f32.xlu2 %v214_v30  ;;  %v134_v15 = vsel %vm133_vm2, %v132_v28, 0.0 }
 0x128   :  { %135 = vadd.xlane.f32.xlu0 %v134_v15 }
 0x129   :  { %v320_v35 = vpop.xlane.xlu2 %319 }
 0x12a   :  { %v322_v37 = vmul.f32 10.0, %v320_v35  ;;  %v240_v39 = vpop.xlane.xlu0 %239  ;;  %v443_v45 = vpop.eup %442 }
 0x12b   :  { %v160_v38 = vpop.xlane.xlu1 %159  ;;  %v242_v44 = vmul.f32 10.0, %v240_v39  ;;  %v291_v49 = vmul.f32 0.6931472, %v443_v45  ;;  %v445_v57 = vpop.eup %444 }
 0x12c   :  { %v162_v43 = vmul.f32 10.0, %v160_v38  ;;  %v333_v46 = vsub.f32 %v332_v36, %v322_v37  ;;  %v145_v58 = vmul.f32 8.0, %v445_v57  ;;  %vm149_vm3 = vweird.f32 %v445_v57 }
 0x12d   :  { %v253_v48 = vsub.f32 %v252_v42, %v242_v44  ;;  %v292_v52 = vadd.f32 %v291_v49, %v281_v50 }
 0x12e   :  { %v173_v47 = vsub.f32 %v172_v40, %v162_v43  ;;  %v334_v21 = vsel %vm133_vm2, %v333_v46, 0.0  ;;  %v146_v60 = vsub.f32 1.0, %v145_v58 }
 0x12f   :  { %335 = vadd.xlane.f32.xlu2 %v334_v21  ;;  %v254_v24 = vsel %vm133_vm2, %v253_v48, 0.0 }
 0x130   :  { %v174_v22 = vsel %vm133_vm2, %v173_v47, 0.0  ;;  %255 = vadd.xlane.f32.xlu0 %v254_v24  ;;  %v147_v2 = vmul.f32 %v445_v57, %v146_v60 }
 0x131   :  { %175 = vadd.xlane.f32.xlu1 %v174_v22 }
 0x132   :  { %v148_v6 = vadd.f32 %v445_v57, %v147_v2 }
 0x133   :  { %v280_v51 = vpop.xlane.xlu1 %279 }
 0x134   :  { %v282_v53 = vmul.f32 10.0, %v280_v51  ;;  %v150_v19 = vsel %vm149_vm3, %v445_v57, %v148_v6 }
 0x136   :  { %v293_v54 = vsub.f32 %v292_v52, %v282_v53 }
 0x138   :  { %v294_v55 = vsel %vm133_vm2, %v293_v54, 0.0 }
 0x139   :  { %295 = vadd.xlane.f32.xlu1 %v294_v55 }
 0x19a   :  { %v216_v59 = vpop.xlane.xlu2 %215 }
 0x19b   :  { %v217_v61 = vrot.slane %v216_v59, 4  ;;  %v136_v62 = vpop.xlane.xlu0 %135 }
 0x19c   :  { %v137_v63 = vrot.slane %v136_v62, 4 }
 0x19d   :  { %v218_v3 = vadd.f32 %v217_v61, %v216_v59 }
 0x19e   :  { %v138_v1 = vadd.f32 %v137_v63, %v136_v62 }
 0x19f   :  { %v219_v7 = vrot.slane %v218_v3, 2 }
 0x1a0   :  { %v139_v12 = vrot.slane %v138_v1, 2 }
 0x1a1   :  { %v220_v23 = vadd.f32 %v219_v7, %v218_v3 }
 0x1a2   :  { %v336_v4 = vpop.xlane.xlu2 %335  ;;  %v140_v5 = vadd.f32 %v139_v12, %v138_v1 }
 0x1a3   :  { %v337_v8 = vrot.slane %v336_v4, 4  ;;  %v256_v10 = vpop.xlane.xlu0 %255  ;;  %v221_v13 = vrot.slane %v220_v23, 1 }
 0x1a4   :  { %v176_v9 = vpop.xlane.xlu1 %175  ;;  %v257_v11 = vrot.slane %v256_v10, 4  ;;  %v141_v14 = vrot.slane %v140_v5, 1 }
 0x1a5   :  { %v177_v0 = vrot.slane %v176_v9, 4  ;;  %v338_v20 = vadd.f32 %v337_v8, %v336_v4  ;;  %v222_v37 = vadd.f32 %v221_v13, %v220_v23 }
 0x1a6   :  { %v258_v17 = vadd.f32 %v257_v11, %v256_v10  ;;  %v142_v18 = vadd.f32 %v141_v14, %v140_v5 }
 0x1a7   :  { %v178_v16 = vadd.f32 %v177_v0, %v176_v9  ;;  %v339_v29 = vrot.slane %v338_v20, 2 }
 0x1a8   :  { %v259_v26 = vrot.slane %v258_v17, 2  ;;  %398 = vpush %v142_v18 }
 0x1a9   :  { %v179_v25 = vrot.slane %v178_v16, 2  ;;  %400 = vpush %v150_v19  ;;  %v340_v36 = vadd.f32 %v339_v29, %v338_v20 }
 0x1aa   :  { %v260_v27 = vadd.f32 %v259_v26, %v258_v17 }
 0x1ab   :  { %v180_v28 = vadd.f32 %v179_v25, %v178_v16  ;;  %v341_v40 = vrot.slane %v340_v36, 1 }
 0x1ac   :  { %v296_v30 = vpop.xlane.xlu1 %295  ;;  %v261_v32 = vrot.slane %v260_v27, 1 }
 0x1ad   :  { %v297_v31 = vrot.slane %v296_v30, 4  ;;  %v181_v15 = vrot.slane %v180_v28, 1  ;;  %v342_v44 = vadd.f32 %v341_v40, %v340_v36 }
 0x1ae   :  { %v262_v35 = vadd.f32 %v261_v32, %v260_v27 }
 0x1af   :  { %v298_v33 = vadd.f32 %v297_v31, %v296_v30  ;;  %v182_v34 = vadd.f32 %v181_v15, %v180_v28 }
 0x1b1   :  { %v299_v38 = vrot.slane %v298_v33, 2  ;;  %402 = vpush %v182_v34 }
 0x1b2   :  { %404 = vpush %v222_v37 }
 0x1b3   :  { %v300_v39 = vadd.f32 %v299_v38, %v298_v33  ;;  %406 = vpush %v262_v35 }
 0x1b5   :  { %v301_v42 = vrot.slane %v300_v39, 1 }
 0x1b7   :  { %v302_v43 = vadd.f32 %v301_v42, %v300_v39 }
 0x1b9   :  { %408 = vpush %v302_v43 }
 0x1ba   :  { %410 = vpush %v342_v44 }
 0x1d9   :  { %s399_s4 = spop %398 }
 0x1da   :  { %s782_s5 = spop %400 }
 0x1db   :  { %s152_s23 = smul.f32 %s782_s5, %s399_s4 }
 0x1dd   :  { %v354_v45 = vstv %s152_s23 }
 0x1de   :  { %v355_v47 = vsel %vm353_vm4, %v354_v45, 0.0 }
 0x1e2   :  { %s403_s24 = spop %402 }
 0x1e3   :  { %s192_s25 = smul.f32 %s403_s24, %s782_s5  ;;  %s405_s26 = spop %404 }
 0x1e4   :  { %s232_s27 = smul.f32 %s405_s26, %s782_s5  ;;  %s407_s28 = spop %406 }
 0x1e5   :  { %v358_v46 = vstv %s192_s25  ;;  %s272_s29 = smul.f32 %s407_s28, %s782_s5 }
 0x1e6   :  { %v359_v48 = vsel %vm357_vm5, %v358_v46, 0.0  ;;  %v362_v21 = vstv %s232_s27 }
 0x1e7   :  { %v360_v49 = vadd.f32 %v359_v48, %v355_v47  ;;  %v363_v22 = vsel %vm361_vm6, %v362_v21, 0.0  ;;  %v366_v50 = vstv %s272_s29 }
 0x1e8   :  { %v367_v51 = vsel %vm365_vm7, %v366_v50, 0.0 }
 0x1e9   :  { %v364_v24 = vadd.f32 %v363_v22, %v360_v49 }
 0x1ea   :  { %s409_s30 = spop %408 }
 0x1eb   :  { %s312_s7 = smul.f32 %s409_s30, %s782_s5  ;;  %s411_s8 = spop %410  ;;  %v368_v52 = vadd.f32 %v367_v51, %v364_v24 }
 0x1ec   :  { %s352_s9 = smul.f32 %s411_s8, %s782_s5 }
 0x1ed   :  { %v370_v53 = vstv %s312_s7 }
 0x1ee   :  { %v371_v54 = vsel %vm369_vm8, %v370_v53, 0.0  ;;  %v374_v55 = vstv %s352_s9 }
 0x1ef   :  { %v372_v56 = vadd.f32 %v371_v54, %v368_v52  ;;  %v375_v57 = vsel %vm373_vm9, %v374_v55, 0.0 }
 0x1f1   :  { %v376_v58 = vadd.f32 %v375_v57, %v372_v56 }
 0x1f3   :  { %377 = vst [vmem:[#allocation13] sm:$0xff] %v376_v58 }
 0x1f4   :  { %388 = dma.vmem_to_hbm [thread:$0]  %s384_s10, 128, %s386_s13, [#allocation4]  }
 0x1f5   :  { %622 = dma.done.wait [#allocation4], 128  }
 0x1f6   :  { %623 = vsyncadd [#allocation4], 4294967168 }
 0x1f7   :  { %393 = vsyncpa [#allocation3], 1 }
 0x1f8   :  { %394 = vsyncpa [#allocation6], 1 }
 0x1f9   :  { %395 = vsyncpa [#allocation9], 1 }
 0x1fa   :  { %396 = vsyncpa [#allocation12], 1 }
 0x1fb   :  { %397 = vsyncpa [#allocation4], 1 }

</bundles_post_ra>
